<compile_context>
chip_gen: v7x
topology: tpu7x:2x2x1
jax: 0.10.0
libtpu: 0.0.40
codegen_flags: <defaults>
</compile_context>

<pallas_src>
import math

import jax
import jax.numpy as jnp
from jax.experimental import pallas as pl
from jax.experimental.pallas import tpu as pltpu


# -----------------------------------------------------------------------------
# Kernel body: replicate one (1, tf) parameter slice across tb batch rows.
# The op is purely HBM-write-DMA-bound; the in-register broadcast and vst
# traffic hide entirely under the output DMA on all three chip generations,
# so all tuning lives in the tiling / VMEM-budget logic below.
# -----------------------------------------------------------------------------
def _broadcast_slots_kernel(slots_ref, out_ref):
    out_ref[...] = jnp.broadcast_to(slots_ref[...], out_ref.shape)


def _tpu_vmem_capacity_bytes() -> int:
    """Per-core VMEM capacity; falls back to the v5e/v6e 128 MiB if unknown."""
    try:
        info = pltpu.get_tpu_info()
        cap = int(getattr(info, "vmem_capacity_bytes", 0))
        if cap > 0:
            return cap
    except Exception:
        pass
    return 128 << 20


def _block_target_bytes(vmem_cap: int) -> int:
    """Generation-aware output-block target.

    * vmem <= 64 MiB (v7x-class: fast ~3.2 TB/s HBM, small VMEM): ~10 MiB blocks
      so the ~0.35 us/step overhead is <10% of a step, while 2x10 MiB of
      double-buffered output stays inside the 32 MiB scoped default.
    * otherwise (v5e/v6e, 128 MiB VMEM): ~8 MiB blocks; vmem_limit_bytes is set
      explicitly below so the v5e 16 MiB scoped default never bites.
    """
    if vmem_cap <= (64 << 20):
        return 10 << 20
    return 8 << 20


def _select_tiles(batch_size: int, feat: int, dtype):
    """Pick (tb, tf, grid, vmem_limit_bytes) for the replication kernel."""
    itemsize = jnp.dtype(dtype).itemsize
    sub = max(8, 32 // itemsize)                   # sublane tile: 8 f32 / 16 bf16 / 32 i8
    vmem_cap = _tpu_vmem_capacity_bytes()
    target = _block_target_bytes(vmem_cap)

    # ---- feature (lane) tile -------------------------------------------------
    # Block the feature axis only when a single sublane-row group would already
    # blow the block budget AND feat is 128-lane aligned. Blocking an unaligned
    # lane axis would turn every row into masked vst's and lose the lane-dense
    # store lever, so unaligned feat always uses the full dimension.
    if feat % 128 == 0:
        max_tf = max(128, ((target // (sub * itemsize)) // 128) * 128)
        tf = feat if feat <= max_tf else max_tf
    else:
        # Full dim is always a legal block (even when < 128 or not a multiple);
        # the last vreg column is masked — acceptable for small feat.
        tf = feat

    # ---- batch (sublane) tile ------------------------------------------------
    row_bytes = tf * itemsize
    tb = max(1, target // row_bytes)
    tb = max(sub, (tb // sub) * sub)               # multiple of the sublane tile
    padded_batch = pl.cdiv(batch_size, sub) * sub
    tb = min(tb, padded_batch)                     # no larger than needed

    # Prefer an EVEN number of row-blocks so v7x's two TensorCores get identical
    # work along the "parallel" axis (odd counts leave one TC a full extra block).
    steps = pl.cdiv(padded_batch, tb)
    if steps % 2 == 1 and padded_batch > sub:
        cand = tb
        while cand > sub:
            cand -= sub
            if pl.cdiv(padded_batch, cand) % 2 == 0:
                tb = cand
                break

    grid = (pl.cdiv(batch_size, tb), pl.cdiv(feat, tf))

    # ---- explicit VMEM budget: double-buffered output + (padded) param + slack.
    out_bytes = 2 * tb * tf * itemsize
    param_bytes = 2 * sub * tf * itemsize          # worst case: 2 bufs, sublane-padded
    est = out_bytes + param_bytes
    vmem_limit = min(vmem_cap, max(32 << 20, int(est * 1.25) + (2 << 20)))

    return int(tb), int(tf), grid, int(vmem_limit)


def learned_forward(slots: jax.Array, batch_size: int, *, materialize: bool = True) -> jax.Array:
    """Repeat the (1, num_slots, slot_dim) parameter over the batch dimension.

    materialize=True  -> Pallas kernel producing a real (B, num_slots, slot_dim)
                         copy (matches torch `.repeat` semantics).
    materialize=False -> zero-copy jnp.broadcast_to view (fastest when a
                         read-only view is acceptable downstream).
    """
    _, num_slots, slot_dim = slots.shape
    feat = num_slots * slot_dim
    out_shape = (batch_size, num_slots, slot_dim)

    if not materialize:
        return jnp.broadcast_to(slots, out_shape)

    if batch_size == 0:
        return jnp.zeros(out_shape, dtype=slots.dtype)

    # Lane-dense 2D view of the parameter: (1, num_slots*slot_dim).
    slots_2d = slots.reshape(1, feat)
    tb, tf, grid, vmem_limit = _select_tiles(batch_size, feat, slots.dtype)

    def _run(single_buffer_param: bool):
        if single_buffer_param:
            # Param block is tiny and (per row-block) constant: one buffer is
            # enough; frees VMEM headroom for the large output blocks.
            param_spec = pl.BlockSpec((1, tf), lambda b, f: (0, f),
                                      pipeline_mode=pl.Buffered(1))
        else:
            param_spec = pl.BlockSpec((1, tf), lambda b, f: (0, f))

        return pl.pallas_call(
            _broadcast_slots_kernel,
            out_shape=jax.ShapeDtypeStruct((batch_size, feat), slots.dtype),
            grid_spec=pltpu.PrefetchScalarGridSpec(
                num_scalar_prefetch=0,
                grid=grid,
                in_specs=[param_spec],
                # tb batch rows x tf lanes per step; tf is either the full feature
                # dim or a multiple of 128 (lane-dense, unmasked stores).
                out_specs=pl.BlockSpec((tb, tf), lambda b, f: (b, f)),
            ),
            compiler_params=pltpu.CompilerParams(
                dimension_semantics=("parallel", "parallel"),
                vmem_limit_bytes=vmem_limit,
            ),
        )(slots_2d)

    try:
        out_2d = _run(True)
    except Exception:
        # Graceful fallback if single-buffered pipeline_mode is rejected by the
        # installed Pallas/Mosaic version.
        out_2d = _run(False)

    return out_2d.reshape(out_shape)


def init_learned_slots(key, num_slots: int, slot_dim: int, dtype=jnp.float32):
    """Parameter init matching the PyTorch module:
    U(-limit, limit) with limit = sqrt(6 / (1 + slot_dim))."""
    limit = math.sqrt(6.0 / (1.0 + slot_dim))
    return jax.random.uniform(
        key, (1, num_slots, slot_dim), dtype=dtype, minval=-limit, maxval=limit
    )


if __name__ == "__main__":
    key = jax.random.PRNGKey(0)

    # Small shapes consistent with the module.
    num_slots = 8
    slot_dim = 32
    batch_size = 2

    slots = init_learned_slots(key, num_slots, slot_dim)

    out = learned_forward(slots, batch_size)
    out = jax.block_until_ready(out)

    # Correctness check vs. pure-JAX reference of torch's `repeat`.
    ref = jnp.broadcast_to(slots, (batch_size, num_slots, slot_dim))
    assert out.shape == (batch_size, num_slots, slot_dim), out.shape
    assert out.dtype == slots.dtype
    assert jnp.array_equal(out, ref)

    # Also exercise the zero-copy fast path (read-only view).
    view = learned_forward(slots, batch_size, materialize=False)
    assert jnp.array_equal(view, ref)

    print("KERNEL_OK")
</pallas_src>

<mosaic_0001>
module attributes {stable_mosaic.version = 11 : i64} {
  func.func @_broadcast_slots_kernel(%arg0: i32, %arg1: i32, %arg2: memref<1x256xf32, #tpu.memory_space<vmem>>, %arg3: memref<8x256xf32, #tpu.memory_space<vmem>>) attributes {dimension_semantics = [#tpu.dimension_semantics<parallel>, #tpu.dimension_semantics<parallel>], iteration_bounds = array<i64: 1, 1>, scalar_prefetch = 0 : i64, scratch_operands = 0 : i64, tpu.core_type = #tpu.core_type<tc>, window_params = [{pipeline_mode = #tpu.pipeline_mode<synchronous>, transform_indices = @transform_0, window_bounds = array<i64: 1, 256>}, {transform_indices = @transform_1, window_bounds = array<i64: 8, 256>}]} {
    %c0 = arith.constant 0 : index
    %c0_0 = arith.constant 0 : index
    %0 = vector.load %arg2[%c0, %c0_0] : memref<1x256xf32, #tpu.memory_space<vmem>>, vector<1x256xf32>
    %1 = vector.shape_cast %0 : vector<1x256xf32> to vector<1x256xf32>
    %2 = vector.broadcast %1 : vector<1x256xf32> to vector<8x256xf32>
    %c0_1 = arith.constant 0 : index
    %c0_2 = arith.constant 0 : index
    %3 = vector.load %arg3[%c0_1, %c0_2] : memref<8x256xf32, #tpu.memory_space<vmem>>, vector<8x256xf32>
    tpu.vector_store %arg3[%c0_1, %c0_2], %2 {strides = array<i32>} : memref<8x256xf32, #tpu.memory_space<vmem>>, vector<8x256xf32>,
    return
  }
  func.func @transform_0(%arg0: i32, %arg1: i32) -> (i32, i32) {
    %c0_i32 = arith.constant 0 : i32
    %c0_i32_0 = arith.constant 0 : i32
    return %c0_i32, %arg1 : i32, i32
  }
  func.func @transform_1(%arg0: i32, %arg1: i32) -> (i32, i32) {
    %c0_i32 = arith.constant 0 : i32
    return %arg0, %arg1 : i32, i32
  }
}

module attributes {stable_mosaic.version = 11 : i64} {
  func.func @_broadcast_slots_kernel(%arg0: i32, %arg1: i32, %arg2: memref<1x256xf32, #tpu.memory_space<vmem>>, %arg3: memref<8x256xf32, #tpu.memory_space<vmem>>) attributes {dimension_semantics = [#tpu.dimension_semantics<parallel>, #tpu.dimension_semantics<parallel>], iteration_bounds = array<i64: 1, 1>, scalar_prefetch = 0 : i64, scratch_operands = 0 : i64, tpu.core_type = #tpu.core_type<tc>, window_params = [{transform_indices = @transform_0, window_bounds = array<i64: 1, 256>}, {transform_indices = @transform_1, window_bounds = array<i64: 8, 256>}]} {
    %c0 = arith.constant 0 : index
    %c0_0 = arith.constant 0 : index
    %0 = vector.load %arg2[%c0, %c0_0] : memref<1x256xf32, #tpu.memory_space<vmem>>, vector<1x256xf32>
    %1 = vector.shape_cast %0 : vector<1x256xf32> to vector<1x256xf32>
    %2 = vector.broadcast %1 : vector<1x256xf32> to vector<8x256xf32>
    %c0_1 = arith.constant 0 : index
    %c0_2 = arith.constant 0 : index
    %3 = vector.load %arg3[%c0_1, %c0_2] : memref<8x256xf32, #tpu.memory_space<vmem>>, vector<8x256xf32>
    tpu.vector_store %arg3[%c0_1, %c0_2], %2 {strides = array<i32>} : memref<8x256xf32, #tpu.memory_space<vmem>>, vector<8x256xf32>,
    return
  }
  func.func @transform_0(%arg0: i32, %arg1: i32) -> (i32, i32) {
    %c0_i32 = arith.constant 0 : i32
    %c0_i32_0 = arith.constant 0 : i32
    return %c0_i32, %arg1 : i32, i32
  }
  func.func @transform_1(%arg0: i32, %arg1: i32) -> (i32, i32) {
    %c0_i32 = arith.constant 0 : i32
    return %arg0, %arg1 : i32, i32
  }
}

</mosaic_0001>

<bundles_post_ra>
// kernel: tpu_custom_call.1
= control target key start
LH: loop header
LB: loop body
LE: loop exit
PB: predicated region body
PF: predicated region fallthrough
CT: control target
= control target key end

     0   :  { %6 = vsyncpa [#allocation3], 0  ;;  %s168_s0 = inlined_call_operand.hbm [shape: f32[1,256], index: 0, kind: input, shape index: {}]   ;;  %s169_s1 = inlined_call_operand.hbm [shape: f32[2,256], index: 1, kind: output, shape index: {}]  }
   0x1   :  { %7 = vsyncpa [#allocation4], 0  ;;  %s129_s6 = smov [#allocation2]   ;;  %s81_s10 = scalar_lea.hbm %s168_s0, 32 }
   0x2   :  { %s14_s7 = sshll.u32 %s129_s6, 4  ;;  %p82_p0 = scmp.ne.s32.totalorder %s168_s0, %s81_s10  ;;  %s15_s7 = int_to_ptr.vmem [resolvable:$true] %s14_s7 }
   0x3   :  { %p85_p1 = scmp.lt.u32.totalorder %s81_s10, %s168_s0 }
   0x5   :  { %p87_p2 = pnand %p85_p1, %p82_p0 }
   0x7   :  { %90 = shalt.err (!%p87_p2)
}
   0x8   :  { %s91_s15 = scalar_lea.vmem %s15_s7, 32  ;;  %p96_p4 = scmp.lt.s32.totalorder %s15_s7, %s15_s7 }
   0x9   :  { %p92_p3 = scmp.ne.s32.totalorder %s15_s7, %s91_s15  ;;  %p97_p5 = scmp.lt.s32.totalorder %s91_s15, %s91_s15 }
   0xb   :  { %p98_p6 = por %p97_p5, %p96_p4 }
   0xd   :  { %p99_p7 = pnand %p98_p6, %p92_p3 }
   0xf   :  { %102 = shalt.err (!%p99_p7)
}
  0x10   :  { %17 = dma.hbm_to_vmem [thread:$0]  %s168_s0, 32, %s15_s7, [#allocation3]  }
  0x11   :  { %125 = dma.done.wait [#allocation3], 32  }
  0x12   :  { %126 = vsyncadd [#allocation3], 4294967264  ;;  %v23_v0 = vlaneseq  ;;  %v130_v1 = vmov 1983009808   ;;  %v21_v7 = vld [vmem:[#allocation2] sm:$0x3] }
  0x13   :  { %v34_v2 = vunpack.c.l.s4 %v130_v1 }
  0x14   :  { %v24_v3 = vshrl.u32 %v23_v0, 7 }
  0x15   :  { %v35_v6 = vunpack.c.0.s8 %v34_v2 }
  0x16   :  { %v25_v4 = vsub.s32 0, %v24_v3  ;;  %v29_v5 = vsub.s32 1, %v24_v3 }
  0x17   :  { %v38_v10 = vsub.s32 %v35_v6, %v24_v3 }
  0x18   :  { %v26_v8 = vrot.slane %v21_v7, %v25_v4  ;;  %v30_v9 = vrot.slane %v21_v7, %v29_v5 }
  0x1a   :  { %v31_v11 = vcombine.low %v26_v8, %v30_v9  ;;  %v32_v12 = vcombine.high %v26_v8, %v30_v9 }
  0x1c   :  { %74 = vst.sshfl [vmem:[#allocation5] sm:$0x33 pattern:$0x76325410] %v31_v11  ;;  %v39_v13 = vrot.slane %v31_v11, %v38_v10  ;;  %v46_v14 = vrot.slane %v32_v12, %v38_v10 }
  0x1d   :  { %75 = vst.sshfl [vmem:[#allocation5 + $0x8] sm:$0x33 pattern:$0x76325410] %v32_v12 }
  0x1e   :  { %v47_v15 = vcombine.high %v39_v13, %v39_v13  ;;  %v48_v16 = vcombine.high %v46_v14, %v46_v14 }
  0x20   :  { %54 = vst [vmem:[#allocation5 + $0x4] sm:$0xf] %v47_v15  ;;  %56 = vst [vmem:[#allocation5 + $0xc] sm:$0xf] %v48_v16 }
  0x21   :  { %61 = vsyncadd [#allocation4], 192  ;;  %s131_s0 = smov [#allocation5]  }
  0x22   :  { %s62_s18 = sshll.u32 %s131_s0, 4  ;;  %s63_s18 = int_to_ptr.vmem [resolvable:$true] %s62_s18 }
  0x23   :  { %s103_s19 = scalar_lea.vmem %s63_s18, 64  ;;  %s107_s20 = scalar_lea.vmem %s63_s18, 256 }
  0x24   :  { %p104_p8 = scmp.ne.s32.totalorder %s63_s18, %s103_s19  ;;  %p108_p9 = scmp.lt.s32.totalorder %s63_s18, %s63_s18 }
  0x25   :  { %p109_p10 = scmp.lt.s32.totalorder %s107_s20, %s103_s19 }
  0x27   :  { %p110_p11 = por %p109_p10, %p108_p9 }
  0x29   :  { %p111_p12 = pnand %p110_p11, %p104_p8 }
  0x2b   :  { %114 = shalt.err (!%p111_p12)
}
  0x2c   :  { %s115_s23 = scalar_lea.hbm %s169_s1, 64 }
  0x2d   :  { %p116_p13 = scmp.ne.s32.totalorder %s169_s1, %s115_s23  ;;  %p119_p0 = scmp.lt.u32.totalorder %s115_s23, %s169_s1 }
  0x2f   :  { %p121_p1 = pnand %p119_p0, %p116_p13 }
  0x31   :  { %124 = shalt.err (!%p121_p1)
}
  0x32   :  { %s132_s28 = smov 64   ;;  %s133_s29 = smov 4  }
  0x33   :  { %68 = dma.vmem_to_hbm [thread:$0]  %s63_s18, 64, %s169_s1, [#allocation4], %s132_s28, %s132_s28, %s133_s29  }
  0x34   :  { %127 = dma.done.wait [#allocation4], 256  }
  0x35   :  { %128 = vsyncadd [#allocation4], 4294967040 }
  0x36   :  { %72 = vsyncpa [#allocation3], 1 }
  0x37   :  { %73 = vsyncpa [#allocation4], 1 }

// kernel: tpu_custom_call.1
= control target key start
LH: loop header
LB: loop body
LE: loop exit
PB: predicated region body
PF: predicated region fallthrough
CT: control target
= control target key end

     0   :  { %6 = vsyncpa [#allocation3], 0  ;;  %s168_s0 = inlined_call_operand.hbm [shape: f32[1,256], index: 0, kind: input, shape index: {}]   ;;  %s169_s1 = inlined_call_operand.hbm [shape: f32[2,256], index: 1, kind: output, shape index: {}]  }
   0x1   :  { %7 = vsyncpa [#allocation4], 0  ;;  %s129_s6 = smov [#allocation2]   ;;  %s81_s10 = scalar_lea.hbm %s168_s0, 32 }
   0x2   :  { %s14_s7 = sshll.u32 %s129_s6, 4  ;;  %p82_p0 = scmp.ne.s32.totalorder %s168_s0, %s81_s10  ;;  %s15_s7 = int_to_ptr.vmem [resolvable:$true] %s14_s7 }
   0x3   :  { %p85_p1 = scmp.lt.u32.totalorder %s81_s10, %s168_s0 }
   0x5   :  { %p87_p2 = pnand %p85_p1, %p82_p0 }
   0x7   :  { %90 = shalt.err (!%p87_p2)
}
   0x8   :  { %s91_s15 = scalar_lea.vmem %s15_s7, 32  ;;  %p96_p4 = scmp.lt.s32.totalorder %s15_s7, %s15_s7 }
   0x9   :  { %p92_p3 = scmp.ne.s32.totalorder %s15_s7, %s91_s15  ;;  %p97_p5 = scmp.lt.s32.totalorder %s91_s15, %s91_s15 }
   0xb   :  { %p98_p6 = por %p97_p5, %p96_p4 }
   0xd   :  { %p99_p7 = pnand %p98_p6, %p92_p3 }
   0xf   :  { %102 = shalt.err (!%p99_p7)
}
  0x10   :  { %17 = dma.hbm_to_vmem [thread:$0]  %s168_s0, 32, %s15_s7, [#allocation3]  }
  0x11   :  { %125 = dma.done.wait [#allocation3], 32  }
  0x12   :  { %126 = vsyncadd [#allocation3], 4294967264  ;;  %v23_v0 = vlaneseq  ;;  %v130_v1 = vmov 1983009808   ;;  %v21_v7 = vld [vmem:[#allocation2] sm:$0x3] }
  0x13   :  { %v34_v2 = vunpack.c.l.s4 %v130_v1 }
  0x14   :  { %v24_v3 = vshrl.u32 %v23_v0, 7 }
  0x15   :  { %v35_v6 = vunpack.c.0.s8 %v34_v2 }
  0x16   :  { %v25_v4 = vsub.s32 0, %v24_v3  ;;  %v29_v5 = vsub.s32 1, %v24_v3 }
  0x17   :  { %v38_v10 = vsub.s32 %v35_v6, %v24_v3 }
  0x18   :  { %v26_v8 = vrot.slane %v21_v7, %v25_v4  ;;  %v30_v9 = vrot.slane %v21_v7, %v29_v5 }
  0x1a   :  { %v31_v11 = vcombine.low %v26_v8, %v30_v9  ;;  %v32_v12 = vcombine.high %v26_v8, %v30_v9 }
  0x1c   :  { %74 = vst.sshfl [vmem:[#allocation5] sm:$0x33 pattern:$0x76325410] %v31_v11  ;;  %v39_v13 = vrot.slane %v31_v11, %v38_v10  ;;  %v46_v14 = vrot.slane %v32_v12, %v38_v10 }
  0x1d   :  { %75 = vst.sshfl [vmem:[#allocation5 + $0x8] sm:$0x33 pattern:$0x76325410] %v32_v12 }
  0x1e   :  { %v47_v15 = vcombine.high %v39_v13, %v39_v13  ;;  %v48_v16 = vcombine.high %v46_v14, %v46_v14 }
  0x20   :  { %54 = vst [vmem:[#allocation5 + $0x4] sm:$0xf] %v47_v15  ;;  %56 = vst [vmem:[#allocation5 + $0xc] sm:$0xf] %v48_v16 }
  0x21   :  { %61 = vsyncadd [#allocation4], 192  ;;  %s131_s0 = smov [#allocation5]  }
  0x22   :  { %s62_s18 = sshll.u32 %s131_s0, 4  ;;  %s63_s18 = int_to_ptr.vmem [resolvable:$true] %s62_s18 }
  0x23   :  { %s103_s19 = scalar_lea.vmem %s63_s18, 64  ;;  %s107_s20 = scalar_lea.vmem %s63_s18, 256 }
  0x24   :  { %p104_p8 = scmp.ne.s32.totalorder %s63_s18, %s103_s19  ;;  %p108_p9 = scmp.lt.s32.totalorder %s63_s18, %s63_s18 }
  0x25   :  { %p109_p10 = scmp.lt.s32.totalorder %s107_s20, %s103_s19 }
  0x27   :  { %p110_p11 = por %p109_p10, %p108_p9 }
  0x29   :  { %p111_p12 = pnand %p110_p11, %p104_p8 }
  0x2b   :  { %114 = shalt.err (!%p111_p12)
}
  0x2c   :  { %s115_s23 = scalar_lea.hbm %s169_s1, 64 }
  0x2d   :  { %p116_p13 = scmp.ne.s32.totalorder %s169_s1, %s115_s23  ;;  %p119_p0 = scmp.lt.u32.totalorder %s115_s23, %s169_s1 }
  0x2f   :  { %p121_p1 = pnand %p119_p0, %p116_p13 }
  0x31   :  { %124 = shalt.err (!%p121_p1)
}
  0x32   :  { %s132_s28 = smov 64   ;;  %s133_s29 = smov 4  }
  0x33   :  { %68 = dma.vmem_to_hbm [thread:$0]  %s63_s18, 64, %s169_s1, [#allocation4], %s132_s28, %s132_s28, %s133_s29  }
  0x34   :  { %127 = dma.done.wait [#allocation4], 256  }
  0x35   :  { %128 = vsyncadd [#allocation4], 4294967040 }
  0x36   :  { %72 = vsyncpa [#allocation3], 1 }
  0x37   :  { %73 = vsyncpa [#allocation4], 1 }

</bundles_post_ra>
